<compile_context>
chip_gen: v6e
topology: v6e:2x2x1
jax: 0.10.0
libtpu: 0.0.40
codegen_flags: <defaults>
</compile_context>

<pallas_src>
import functools

import jax
import jax.numpy as jnp
from jax import lax
from jax.experimental import pallas as pl
from jax.experimental.pallas import tpu as pltpu


# ---------------------------------------------------------------------------
# Packed-parameter layout (single (24, 128) f32 tile, one DMA):
#   rows  0:12, cols  0:15 -> W1^T (12,15)
#   rows  0:12, col  15    -> b1   (12,) column
#   rows 16:20, cols  0:12 -> W2^T (4,12)
#   rows 16:20, col  12    -> b2   (4,)  column
#   rows 16:20, col  13    -> W3   (4,)  column
#   row  20,    col   0    -> b3   scalar
# ---------------------------------------------------------------------------
_P_ROWS = 24
_P_COLS = 128


def mlp_kernel(x_ref, p_ref, o_ref):
    x = x_ref[...]                        # (bb, 15) natural-layout batch block

    # Static slices straight off the resident packed-parameter ref.
    w1T = p_ref[0:12, 0:15]               # (12, 15)
    b1 = p_ref[0:12, 15:16]               # (12, 1)
    w2T = p_ref[16:20, 0:12]              # (4, 12)
    b2 = p_ref[16:20, 12:13]              # (4, 1)
    w3c = p_ref[16:20, 13:14]             # (4, 1)
    b3 = p_ref[20:21, 0:1]                # (1, 1)

    # linear1 + relu (MXU): contract the shared feature axis of (12,15) and
    # (bb,15) -> (12, bb); everything downstream stays lane-dense in batch.
    h1 = lax.dot_general(
        w1T, x, (((1,), (1,)), ((), ())),
        preferred_element_type=jnp.float32,
        precision=lax.Precision.HIGHEST) + b1
    h1 = jnp.maximum(h1, 0.0)             # (12, bb)

    # linear2 + relu2 (MXU)
    h2 = lax.dot_general(
        w2T, h1, (((1,), (0,)), ((), ())),
        preferred_element_type=jnp.float32,
        precision=lax.Precision.HIGHEST) + b2
    h2 = jnp.maximum(h2, 0.0)             # (4, bb)

    # linear3: degenerate (K=4, N=1) matvec on the VPU + 4-sublane reduce;
    # keeps the MXU weight-push/drain off the critical path.
    z = jnp.sum(h2 * w3c, axis=0, keepdims=True) + b3   # (1, bb)

    # sigmoid (EUP) + lane-dense store.
    o_ref[...] = jax.nn.sigmoid(z)


def _round_up(n, m):
    return ((n + m - 1) // m) * m


def _choose_block(B, block_b):
    """Pick a batch block size (lanes) and grid length.

    Goals: blocks as large as possible (amortize ~0.35us per grid step), at
    least 2 roughly-equal steps when the batch allows it (v7x has 2 TCs), and
    a bounded VMEM footprint (a (bb,15) block lane-pads to bb*512 bytes).
    """
    if B < 256:
        return B, 1                       # single full-array block
    Bp = _round_up(B, 128)
    n = max(2, -(-Bp // block_b))         # ceil-div, at least 2 steps
    if n % 2:
        n += 1                            # even step count -> balanced on 2 TCs
    bb = _round_up(-(-Bp // n), 128)
    n = -(-Bp // bb)
    return bb, n


def pack_params(params):
    """Pack the six parameter tensors into one (24, 128) f32 tile.

    Call ONCE when parameters are created/updated (not per forward call).
    Expects weights in (in, out) layout and biases as (1, out).  NOTE:
    PyTorch nn.Linear stores weight as (out, in) -> transpose before packing.
    """
    w1, b1, w2, b2, w3, b3 = params
    assert w1.shape == (15, 12) and b1.shape == (1, 12), (w1.shape, b1.shape)
    assert w2.shape == (12, 4) and b2.shape == (1, 4), (w2.shape, b2.shape)
    assert w3.shape == (4, 1) and b3.shape == (1, 1), (w3.shape, b3.shape)
    P = jnp.zeros((_P_ROWS, _P_COLS), jnp.float32)
    P = P.at[0:12, 0:15].set(w1.T)
    P = P.at[0:12, 15].set(b1[0])
    P = P.at[16:20, 0:12].set(w2.T)
    P = P.at[16:20, 12].set(b2[0])
    P = P.at[16:20, 13].set(w3[:, 0])
    P = P.at[20, 0].set(b3[0, 0])
    return P


@functools.partial(jax.jit, static_argnames=("block_b",))
def net_forward(x, packed_params, block_b=16384):
    """Forward pass; `packed_params` is the (24,128) tile from pack_params."""
    B, F = x.shape
    assert F == 15, f"expected 15 input features, got {F}"
    bb, n = _choose_block(B, block_b)

    out = pl.pallas_call(
        mlp_kernel,
        out_shape=jax.ShapeDtypeStruct((1, n * bb), jnp.float32),
        grid=(n,),
        in_specs=[
            # x: natural layout, one contiguous HBM read per block (streamed).
            pl.BlockSpec((bb, 15), lambda i: (i, 0)),
            # params: resident across the whole grid.
            pl.BlockSpec((_P_ROWS, _P_COLS), lambda i: (0, 0)),
        ],
        out_specs=pl.BlockSpec((1, bb), lambda i: (0, i)),
        compiler_params=pltpu.CompilerParams(
            dimension_semantics=("parallel",),
            vmem_limit_bytes=32 * 1024 * 1024,
        ),
    )(x, packed_params)

    return out[0, :B].reshape(B, 1)


def init_params(key):
    """Deterministic init mimicking PyTorch's default nn.Linear init
    (uniform(-1/sqrt(fan_in), 1/sqrt(fan_in))), stored as (in, out) / (1, out)."""
    def linear(key, fan_in, fan_out):
        kw, kb = jax.random.split(key)
        bound = 1.0 / jnp.sqrt(jnp.float32(fan_in))
        w = jax.random.uniform(kw, (fan_in, fan_out), jnp.float32, -bound, bound)
        b = jax.random.uniform(kb, (1, fan_out), jnp.float32, -bound, bound)
        return w, b

    k1, k2, k3 = jax.random.split(key, 3)
    w1, b1 = linear(k1, 15, 12)
    w2, b2 = linear(k2, 12, 4)
    w3, b3 = linear(k3, 4, 1)
    return (w1, b1, w2, b2, w3, b3)


def reference_forward(x, params):
    """Plain-JAX reference for correctness checking."""
    w1, b1, w2, b2, w3, b3 = params
    hp = lax.Precision.HIGHEST
    h1 = jnp.maximum(jnp.dot(x, w1, precision=hp) + b1, 0.0)
    h2 = jnp.maximum(jnp.dot(h1, w2, precision=hp) + b2, 0.0)
    return jax.nn.sigmoid(jnp.dot(h2, w3, precision=hp) + b3)


if __name__ == "__main__":
    key = jax.random.PRNGKey(0)
    kx, kp, kx2 = jax.random.split(key, 3)
    params = init_params(kp)
    P = pack_params(params)   # packed once, hoisted out of the forward path

    # Spec-sized small batch (single full-array block path).
    x_small = jax.random.normal(kx, (8, 15), jnp.float32)
    out_small = jax.block_until_ready(net_forward(x_small, P))
    ref_small = reference_forward(x_small, params)
    assert out_small.shape == (8, 1)
    assert jnp.allclose(out_small, ref_small, atol=1e-5, rtol=1e-5)

    # Larger batch: exercises the 2-step balanced grid + clamped tail block.
    x_big = jax.random.normal(kx2, (2500, 15), jnp.float32)
    out_big = jax.block_until_ready(net_forward(x_big, P))
    ref_big = reference_forward(x_big, params)
    assert out_big.shape == (2500, 1)
    assert jnp.allclose(out_big, ref_big, atol=1e-5, rtol=1e-5)

    print("KERNEL_OK")
</pallas_src>

<mosaic_0001>
module attributes {stable_mosaic.version = 11 : i64} {
  func.func @mlp_kernel(%arg0: i32, %arg1: memref<8x15xf32, #tpu.memory_space<vmem>>, %arg2: memref<24x128xf32, #tpu.memory_space<vmem>>, %arg3: memref<1x8xf32, #tpu.memory_space<vmem>>) attributes {dimension_semantics = [#tpu.dimension_semantics<parallel>], iteration_bounds = array<i64: 1>, scalar_prefetch = 0 : i64, scratch_operands = 0 : i64, tpu.core_type = #tpu.core_type<tc>, window_params = [{transform_indices = @transform_0, window_bounds = array<i64: 8, 15>}, {pipeline_mode = #tpu.pipeline_mode<synchronous>, transform_indices = @transform_1, window_bounds = array<i64: 24, 128>}, {transform_indices = @transform_2, window_bounds = array<i64: 1, 8>}]} {
    %c0 = arith.constant 0 : index
    %c0_0 = arith.constant 0 : index
    %0 = vector.load %arg1[%c0, %c0_0] : memref<8x15xf32, #tpu.memory_space<vmem>>, vector<8x15xf32>
    %c0_1 = arith.constant 0 : index
    %c0_2 = arith.constant 0 : index
    %1 = vector.load %arg2[%c0_1, %c0_2] : memref<24x128xf32, #tpu.memory_space<vmem>>, vector<12x15xf32>
    %c0_3 = arith.constant 0 : index
    %c15 = arith.constant 15 : index
    %2 = vector.load %arg2[%c0_3, %c15] : memref<24x128xf32, #tpu.memory_space<vmem>>, vector<12x1xf32>
    %c16 = arith.constant 16 : index
    %c0_4 = arith.constant 0 : index
    %3 = vector.load %arg2[%c16, %c0_4] : memref<24x128xf32, #tpu.memory_space<vmem>>, vector<4x12xf32>
    %c16_5 = arith.constant 16 : index
    %c12 = arith.constant 12 : index
    %4 = vector.load %arg2[%c16_5, %c12] : memref<24x128xf32, #tpu.memory_space<vmem>>, vector<4x1xf32>
    %c16_6 = arith.constant 16 : index
    %c13 = arith.constant 13 : index
    %5 = vector.load %arg2[%c16_6, %c13] : memref<24x128xf32, #tpu.memory_space<vmem>>, vector<4x1xf32>
    %c20 = arith.constant 20 : index
    %c0_7 = arith.constant 0 : index
    %6 = vector.load %arg2[%c20, %c0_7] : memref<24x128xf32, #tpu.memory_space<vmem>>, vector<1x1xf32>
    %cst = arith.constant dense<0.000000e+00> : vector<12x8xf32>
    %7 = tpu.matmul %1, %0, %cst {dimension_numbers = #tpu.dot_dimension_numbers<[1], [1], [0], [0], [0, 0, 1, 0], [], []>, precision = #tpu.contract_precision<fp32>} : vector<12x15xf32>, vector<8x15xf32>, vector<12x8xf32> -> vector<12x8xf32>
    %8 = vector.broadcast %2 : vector<12x1xf32> to vector<12x8xf32>
    %9 = arith.addf %7, %8 : vector<12x8xf32>
    %cst_8 = arith.constant 0.000000e+00 : f32
    %10 = vector.broadcast %cst_8 : f32 to vector<12x8xf32>
    %11 = arith.maximumf %9, %10 : vector<12x8xf32>
    %cst_9 = arith.constant dense<0.000000e+00> : vector<4x8xf32>
    %12 = tpu.matmul %3, %11, %cst_9 {dimension_numbers = #tpu.dot_dimension_numbers<[1], [0], [0], [1], [0, 0, 1, 1], [], []>, precision = #tpu.contract_precision<fp32>} : vector<4x12xf32>, vector<12x8xf32>, vector<4x8xf32> -> vector<4x8xf32>
    %13 = vector.broadcast %4 : vector<4x1xf32> to vector<4x8xf32>
    %14 = arith.addf %12, %13 : vector<4x8xf32>
    %cst_10 = arith.constant 0.000000e+00 : f32
    %15 = vector.broadcast %cst_10 : f32 to vector<4x8xf32>
    %16 = arith.maximumf %14, %15 : vector<4x8xf32>
    %17 = vector.broadcast %5 : vector<4x1xf32> to vector<4x8xf32>
    %18 = arith.mulf %16, %17 : vector<4x8xf32>
    %cst_11 = arith.constant dense<0.000000e+00> : vector<8xf32>
    %19 = vector.multi_reduction <add>, %18, %cst_11 [0] : vector<4x8xf32> to vector<8xf32>
    %20 = vector.shape_cast %19 : vector<8xf32> to vector<1x8xf32>
    %21 = vector.broadcast %6 : vector<1x1xf32> to vector<1x8xf32>
    %22 = arith.addf %20, %21 : vector<1x8xf32>
    %23 = arith.negf %22 : vector<1x8xf32>
    %24 = math.exp %23 : vector<1x8xf32>
    %cst_12 = arith.constant 1.000000e+00 : f32
    %25 = vector.broadcast %cst_12 : f32 to vector<1x8xf32>
    %26 = arith.addf %25, %24 : vector<1x8xf32>
    %27 = arith.divf %25, %26 : vector<1x8xf32>
    %c0_13 = arith.constant 0 : index
    %c0_14 = arith.constant 0 : index
    %28 = vector.load %arg3[%c0_13, %c0_14] : memref<1x8xf32, #tpu.memory_space<vmem>>, vector<1x8xf32>
    tpu.vector_store %arg3[%c0_13, %c0_14], %27 {strides = array<i32>} : memref<1x8xf32, #tpu.memory_space<vmem>>, vector<1x8xf32>,
    return
  }
  func.func @transform_0(%arg0: i32) -> (i32, i32) {
    %c0_i32 = arith.constant 0 : i32
    %c0_i32_0 = arith.constant 0 : i32
    return %arg0, %c0_i32 : i32, i32
  }
  func.func @transform_1(%arg0: i32) -> (i32, i32) {
    %c0_i32 = arith.constant 0 : i32
    %c0_i32_0 = arith.constant 0 : i32
    %c0_i32_1 = arith.constant 0 : i32
    return %c0_i32, %c0_i32_0 : i32, i32
  }
  func.func @transform_2(%arg0: i32) -> (i32, i32) {
    %c0_i32 = arith.constant 0 : i32
    %c0_i32_0 = arith.constant 0 : i32
    return %c0_i32, %arg0 : i32, i32
  }
}

</mosaic_0001>

<bundles_post_ra>
// kernel: net_forward.1
= control target key start
LH: loop header
LB: loop body
LE: loop exit
PB: predicated region body
PF: predicated region fallthrough
CT: control target
= control target key end

     0   :  { %7 = vsyncpa [#allocation3], 0  ;;  %s1326_s0 = inlined_call_operand.hbm [shape: f32[8,15], index: 0, kind: input, shape index: {}]   ;;  %s1327_s1 = inlined_call_operand.hbm [shape: f32[24,128], index: 1, kind: input, shape index: {}]   ;;  %s1328_s2 = inlined_call_operand.hbm [shape: f32[1,8], index: 2, kind: output, shape index: {}]  }
   0x1   :  { %8 = vsyncpa [#allocation6], 0 }
   0x2   :  { %9 = vsyncpa [#allocation4], 0  ;;  %s1261_s9 = smov [#allocation2]   ;;  %s1262_s11 = smov [#allocation5]  }
   0x3   :  { %s16_s10 = sshll.u32 %s1261_s9, 4  ;;  %s25_s12 = sshll.u32 %s1262_s11, 4  ;;  %s17_s10 = int_to_ptr.vmem [resolvable:$true] %s16_s10  ;;  %s26_s12 = int_to_ptr.vmem [resolvable:$true] %s25_s12 }
   0x4   :  { %s1203_s13 = scalar_lea.vmem %s17_s10, 128  ;;  %p1208_p1 = scmp.lt.s32.totalorder %s17_s10, %s17_s10 }
   0x5   :  { %p1204_p0 = scmp.ne.s32.totalorder %s17_s10, %s1203_s13  ;;  %p1209_p2 = scmp.lt.s32.totalorder %s1203_s13, %s1203_s13 }
   0x7   :  { %p1210_p3 = por %p1209_p2, %p1208_p1 }
   0x9   :  { %p1211_p4 = pnand %p1210_p3, %p1204_p0 }
   0xb   :  { %1214 = shalt.err (!%p1211_p4)
}
   0xc   :  { %19 = dma.hbm_to_vmem [thread:$0]  %s1326_s0, 128, %s17_s10, [#allocation3]  }
   0xd   :  { %s1223_s16 = scalar_lea.vmem %s26_s12, 384  ;;  %p1228_p6 = scmp.lt.s32.totalorder %s26_s12, %s26_s12 }
   0xe   :  { %p1224_p5 = scmp.ne.s32.totalorder %s26_s12, %s1223_s16  ;;  %p1229_p7 = scmp.lt.s32.totalorder %s1223_s16, %s1223_s16 }
  0x10   :  { %p1230_p8 = por %p1229_p7, %p1228_p6 }
  0x12   :  { %p1231_p9 = pnand %p1230_p8, %p1224_p5 }
  0x14   :  { %1234 = shalt.err (!%p1231_p9)
}
  0x15   :  { %s1263_s17 = smov 128   ;;  %s1264_s18 = smov 8  }
  0x16   :  { %31 = dma.hbm_to_vmem [thread:$0]  %s1327_s1, 384, %s26_s12, [#allocation6], %s1263_s17, %s1263_s17, %s1264_s18  }
  0x17   :  { %1255 = dma.done.wait [#allocation3], 128  }
  0x18   :  { %1256 = vsyncadd [#allocation3], 4294967168 }
  0x19   :  { %1257 = dma.done.wait [#allocation6], 384  }
  0x1a   :  { %1258 = vsyncadd [#allocation6], 4294966912  ;;  %v1265_v0 = vmov 15   ;;  %vm53_vm0 = vcmask 121856   ;;  %v38_v1 = vld [vmem:[#allocation2] sm:$0xff]  ;;  %v39_v2 = vld [vmem:[#allocation5] sm:$0xff] }
  0x1b   :  { %1187 = vset.pattern.permute.xlu0 %v1265_v0  ;;  %v40_v3 = vld [vmem:[#allocation5 + $0x8] sm:$0xf]  ;;  %v59_v4 = vsel %vm53_vm0, %v38_v1, 0  ;;  %v54_v5 = vsel %vm53_vm0, %v39_v2, 0  ;;  %v1266_v22 = vmov 0.0   ;;  %vm1267_vm1 = vmmov 0  }
  0x1c   :  { %v56_v6 = vsel %vm53_vm0, %v40_v3, 0  ;;  %50 = vperm.xlu0 %1187, %v40_v3   ;;  %v92_v7 = vand.u32 4294901760, %v59_v4  ;;  %v127_v8 = vand.u32 4294901760, %v54_v5  ;;  %v42_v23 = vld [vmem:[#allocation5 + $0x14] sm:$0x1]  ;;  %v1268_v25 = vmov 12  }
  0x1d   :  { %v137_v9 = vand.u32 4294901760, %v56_v6  ;;  %v41_v24 = vld [vmem:[#allocation5 + $0x10] sm:$0xf]  ;;  %1188 = vset.pattern.permute.xlu1 %v1268_v25  ;;  %v1269_v26 = vmov 0   ;;  %v1270_v27 = vmov 13   ;;  %vm557_vm2 = vcmask 97280  }
  0x1e   :  { %1104 = vmatprep.subr.mxu0 %v92_v7  ;;  %v128_v10 = vsub.f32 %v54_v5, %v127_v8  ;;  %v179_v11 = vsub.f32 %v59_v4, %v92_v7  ;;  %1111 = vmatprep.mubr.f32.mxu1 %v127_v8  ;;  %v558_v29 = vsel %vm557_vm2, %v41_v24, 0  ;;  %vm560_vm3 = vcmask 1043456   ;;  %s1271_s0 = smov [#allocation7]  }
  0x1f   :  { %v138_v12 = vsub.f32 %v56_v6, %v137_v9  ;;  %1105 = vmatpush3.xpose.msra.mxu0 %v92_v7  ;;  %554 = vperm.xlu1 %1188, %v41_v24   ;;  %v1299_v34 = vand.u32 4294901760, %v558_v29  ;;  %vm1029_vm4 = vcmask 60416   ;;  %s1057_s1 = sshll.u32 %s1271_s0, 4  ;;  %vm1049_vm5 = vcmask 57344   ;;  %s1058_s1 = int_to_ptr.vmem [resolvable:$true] %s1057_s1 }
  0x20   :  { %45 = vperm.xlu0 %1187, %v39_v2   ;;  %v129_v13 = vand.u32 4294901760, %v128_v10  ;;  %v180_v14 = vand.u32 4294901760, %v179_v11  ;;  %1114 = vmatprep.subr.mxu0 %v179_v11  ;;  %s1235_s21 = scalar_lea.vmem %s1058_s1, 16  ;;  %s1239_s22 = scalar_lea.vmem %s1058_s1, 32 }
  0x21   :  { %v139_v15 = vand.u32 4294901760, %v138_v12  ;;  %v632_v43 = vsub.f32 %v558_v29, %v1299_v34  ;;  %p1236_p10 = scmp.ne.s32.totalorder %s1058_s1, %s1235_s21  ;;  %p1240_p11 = scmp.lt.s32.totalorder %s1058_s1, %s1058_s1 }
  0x22   :  { %v130_v16 = vsub.f32 %v128_v10, %v129_v13  ;;  %v181_v17 = vsub.f32 %v179_v11, %v180_v14  ;;  %p1241_p12 = scmp.lt.s32.totalorder %s1239_s22, %s1235_s21 }
  0x23   :  { %v140_v18 = vsub.f32 %v138_v12, %v139_v15  ;;  %1189 = vset.pattern.permute.xlu1 %v1270_v27  ;;  %v633_v52 = vand.u32 4294901760, %v632_v43 }
  0x24   :  { %v131_v19 = vand.u32 4294901760, %v130_v16  ;;  %v182_v20 = vand.u32 4294901760, %v181_v17  ;;  %1190 = vset.pattern.permute.xlu0 %v1269_v26  ;;  %1025 = vperm.xlu1 %1189, %v41_v24   ;;  %p1242_p13 = por %p1241_p12, %p1240_p11 }
  0x25   :  { %v141_v21 = vand.u32 4294901760, %v140_v18  ;;  %1039 = vperm.xlu0 %1190, %v42_v23   ;;  %v634_v59 = vsub.f32 %v632_v43, %v633_v52 }
  0x26   :  { %1106 = vmatprep.mubr.f32.mxu0 %v131_v19  ;;  %1109 = vmatprep.subr.mxu1 %v182_v20  ;;  %p1243_p0 = pnand %p1242_p13, %p1236_p10 }
  0x27   :  { %1107 = vmatmul.mubr.f32.vlgmr.msra.gmra.mxu0 %v141_v21  ;;  %1110 = vmatpush3.xpose.msra.mxu1 %v182_v20  ;;  %v635_v0 = vand.u32 4294901760, %v634_v59 }
  0x28   :  { %1115 = vmatpush3.xpose.msra.mxu0 %v179_v11  ;;  %1116 = vmatprep.mubr.f32.mxu0 %v128_v10 }
  0x29   :  { %1119 = vmatprep.subr.mxu1 %v92_v7  ;;  %1124 = vmatprep.subr.mxu0 %v180_v14 }
  0x2a   :  { %1112 = vmatmul.mubr.f32.vlgmr.msra.gmra.mxu1 %v137_v9 }
  0x2b   :  { %1117 = vmatmul.mubr.f32.vlgmr.msra.gmra.mxu0 %v138_v12  ;;  %1120 = vmatpush3.xpose.msra.mxu1 %v92_v7 }
  0x2c   :  { %1125 = vmatpush3.xpose.msra.mxu0 %v180_v14  ;;  %1121 = vmatprep.mubr.f32.mxu1 %v129_v13 }
  0x2d   :  { %1126 = vmatprep.mubr.f32.mxu0 %v127_v8  ;;  %1129 = vmatprep.subr.mxu1 %v92_v7 }
  0x2e   :  { %1122 = vmatmul.mubr.f32.vlgmr.msra.gmra.mxu1 %v139_v15  ;;  %1134 = vmatprep.subr.mxu0 %v1266_v22 }
  0x2f   :  { %1127 = vmatmul.mubr.f32.vlgmr.msra.gmra.mxu0 %v137_v9  ;;  %1130 = vmatpush3.xpose.msra.mxu1 %v92_v7 }
  0x30   :  { %1131 = vmatprep.mubr.f32.mxu1 %v127_v8  ;;  %1141 = vmatprep.subr.mxu1 %v1266_v22 }
  0x31   :  { %1138 = vmatprep.mubr.msk.f32.mxu0 %vm1267_vm1, %v1266_v22 }
  0x32   :  { %1132 = vmatmul.mubr.f32.vlgmr.msra.gmra.mxu1 %v137_v9 }
  0x33   :  { %1145 = vmatprep.mubr.msk.f32.mxu1 %vm1267_vm1, %v1266_v22 }
  0x97   :  { %v51_v28 = vpop.permute.xlu0 %50 }
  0x9a   :  { %v555_v10 = vpop.permute.xlu1 %554 }
  0x9b   :  { %v46_v32 = vpop.permute.xlu0 %45 }
  0xe7   :  { %v1108_v30 = vpop.f32.mrf.mxu0 }
  0xe8   :  { %v144_v31 = vadd.f32 %v1108_v30, %v51_v28  ;;  %v1026_v28 = vpop.permute.xlu1 %1025 }
  0xe9   :  { %v133_v33 = vpop.f32.mrf.mxu0 }
  0xea   :  { %v134_v35 = vadd.f32 %v133_v33, %v46_v32  ;;  %v1113_v36 = vpop.f32.mrf.mxu1 }
  0xeb   :  { %v226_v37 = vadd.f32 %v1113_v36, %v144_v31  ;;  %v1118_v38 = vpop.f32.mrf.mxu0 }
  0xec   :  { %v219_v39 = vpop.f32.mrf.mxu1 }
  0xed   :  { %v307_v40 = vadd.f32 %v1118_v38, %v226_v37  ;;  %v220_v41 = vadd.f32 %v219_v39, %v134_v35  ;;  %v299_v42 = vpop.f32.mrf.mxu0  ;;  %v1040_v37 = vpop.permute.xlu0 %1039 }
  0xee   :  { %v1123_v44 = vpop.f32.mrf.mxu1 }
  0xef   :  { %v300_v45 = vadd.f32 %v299_v42, %v220_v41  ;;  %v389_v46 = vadd.f32 %v1123_v44, %v307_v40  ;;  %v1128_v47 = vpop.f32.mrf.mxu0 }
  0xf0   :  { %v380_v48 = vpop.f32.mrf.mxu1 }
  0xf1   :  { %v469_v49 = vadd.f32 %v1128_v47, %v389_v46  ;;  %v381_v50 = vadd.f32 %v380_v48, %v300_v45  ;;  %v462_v51 = vpop.f32.mrf.mxu0 }
  0xf2   :  { %v1133_v53 = vpop.f32.mrf.mxu1 }
  0xf3   :  { %v463_v54 = vadd.f32 %v462_v51, %v381_v50  ;;  %v547_v55 = vadd.f32 %v1133_v53, %v469_v49 }
  0xf4   :  { %v540_v56 = vpop.f32.mrf.mxu1 }
  0xf5   :  { %v551_v57 = vmax.f32 %v547_v55, 0.0  ;;  %v541_v58 = vadd.f32 %v540_v56, %v463_v54 }
  0xf7   :  { %v562_v60 = vsel %vm560_vm3, %v551_v57, 0  ;;  %v550_v61 = vmax.f32 %v541_v58, 0.0 }
  0xf8   :  { %v593_v62 = vand.u32 4294901760, %v562_v60 }
  0xf9   :  { %v596_v63 = vand.u32 4294901760, %v550_v61 }
  0xfa   :  { %v671_v1 = vsub.f32 %v562_v60, %v593_v62  ;;  %1135 = vmatpush3.msra.mxu0 %v593_v62 }
  0xfb   :  { %v678_v2 = vsub.f32 %v550_v61, %v596_v63  ;;  %1136 = vmatprep.subr.mxu0 %v1266_v22 }
  0xfc   :  { %v672_v3 = vand.u32 4294901760, %v671_v1  ;;  %1137 = vmatpush3.msra.mxu0 %v596_v63 }
  0xfd   :  { %v679_v4 = vand.u32 4294901760, %v678_v2  ;;  %1148 = vmatprep.subr.mxu0 %v1266_v22  ;;  %1139 = vmatmul.mubr.f32.vlgmr.msra.gmra.mxu0 %v635_v0 }
  0xfe   :  { %1149 = vmatpush3.msra.mxu0 %v671_v1  ;;  %1152 = vmatprep.mubr.msk.f32.mxu0 %vm1267_vm1, %v1266_v22  ;;  %v673_v5 = vsub.f32 %v671_v1, %v672_v3 }
  0xff   :  { %v680_v6 = vsub.f32 %v678_v2, %v679_v4  ;;  %1150 = vmatprep.subr.mxu0 %v1266_v22 }
 0x100   :  { %1151 = vmatpush3.msra.mxu0 %v678_v2  ;;  %v674_v7 = vand.u32 4294901760, %v673_v5 }
 0x101   :  { %1162 = vmatprep.subr.mxu0 %v1266_v22  ;;  %1153 = vmatmul.mubr.f32.vlgmr.msra.gmra.mxu0 %v632_v43  ;;  %v681_v8 = vand.u32 4294901760, %v680_v6 }
 0x102   :  { %1142 = vmatpush3.msra.mxu1 %v674_v7  ;;  %1163 = vmatpush3.msra.mxu0 %v672_v3 }
 0x103   :  { %1143 = vmatprep.subr.mxu1 %v1266_v22  ;;  %1164 = vmatprep.subr.mxu0 %v1266_v22 }
 0x104   :  { %1144 = vmatpush3.msra.mxu1 %v681_v8  ;;  %1165 = vmatpush3.msra.mxu0 %v679_v4 }
 0x105   :  { %1146 = vmatmul.mubr.f32.vlgmr.msra.gmra.mxu1 %v1299_v34  ;;  %1155 = vmatprep.subr.mxu1 %v1266_v22 }
 0x106   :  { %1156 = vmatpush3.msra.mxu1 %v593_v62  ;;  %1159 = vmatprep.mubr.msk.f32.mxu1 %vm1267_vm1, %v1266_v22 }
 0x107   :  { %1157 = vmatprep.subr.mxu1 %v1266_v22  ;;  %1166 = vmatprep.mubr.msk.f32.mxu0 %vm1267_vm1, %v1266_v22 }
 0x108   :  { %1158 = vmatpush3.msra.mxu1 %v596_v63  ;;  %1167 = vmatmul.mubr.f32.vlgmr.msra.gmra.mxu0 %v1299_v34 }
 0x109   :  { %1160 = vmatmul.mubr.f32.vlgmr.msra.gmra.mxu1 %v633_v52  ;;  %1169 = vmatprep.subr.mxu1 %v1266_v22 }
 0x10a   :  { %1170 = vmatpush3.msra.mxu1 %v593_v62  ;;  %1173 = vmatprep.mubr.msk.f32.mxu1 %vm1267_vm1, %v1266_v22 }
 0x10b   :  { %1171 = vmatprep.subr.mxu1 %v1266_v22 }
 0x10c   :  { %1172 = vmatpush3.msra.mxu1 %v596_v63 }
 0x10d   :  { %1174 = vmatmul.mubr.f32.vlgmr.msra.gmra.mxu1 %v1299_v34 }
 0x1bd   :  { %v637_v9 = vpop.f32.mrf.mxu0 }
 0x1be   :  { %v638_v13 = vadd.f32 %v637_v9, %v555_v10 }
 0x1bf   :  { %v1140_v11 = vpop.f32.mrf.mxu0 }
 0x1c1   :  { %v794_v12 = vpop.f32.mrf.mxu0 }
 0x1c3   :  { %v1154_v14 = vpop.f32.mrf.mxu0 }
 0x1c5   :  { %v718_v15 = vpop.f32.mrf.mxu1 }
 0x1c6   :  { %v719_v16 = vadd.f32 %v718_v15, %v638_v13 }
 0x1c7   :  { %v1147_v17 = vpop.f32.mrf.mxu1 }
 0x1c8   :  { %v795_v18 = vadd.f32 %v794_v12, %v719_v16  ;;  %v946_v19 = vpop.f32.mrf.mxu0 }
 0x1c9   :  { %v869_v20 = vpop.f32.mrf.mxu1 }
 0x1ca   :  { %v870_v21 = vadd.f32 %v869_v20, %v795_v18  ;;  %v1168_v23 = vpop.f32.mrf.mxu0 }
 0x1cb   :  { %v1161_v24 = vpop.f32.mrf.mxu1 }
 0x1cc   :  { %v947_v25 = vadd.f32 %v946_v19, %v870_v21 }
 0x1cd   :  { %v1019_v22 = vpop.f32.mrf.mxu1 }
 0x1ce   :  { %v1020_v26 = vadd.f32 %v1019_v22, %v947_v25 }
 0x1cf   :  { %v1175_v27 = vpop.f32.mrf.mxu1 }
 0x1d0   :  { %v1023_v29 = vmax.f32 %v1020_v26, 0.0 }
 0x1d2   :  { %v1028_v30 = vmul.f32 %v1026_v28, %v1023_v29 }
 0x1d4   :  { %v1030_v31 = vsel %vm1029_vm4, %v1028_v30, 0.0 }
 0x1d5   :  { %v1031_v32 = vrot.slane %v1030_v31, 4 }
 0x1d7   :  { %v1032_v33 = vadd.f32 %v1031_v32, %v1030_v31 }
 0x1d9   :  { %v1033_v34 = vrot.slane %v1032_v33, 2 }
 0x1db   :  { %v1034_v35 = vadd.f32 %v1033_v34, %v1032_v33 }
 0x1dd   :  { %v1035_v36 = vrot.slane %v1034_v35, 1 }
 0x1df   :  { %v1036_v38 = vadd.f32 %v1035_v36, %v1034_v35 }
 0x1e1   :  { %v1042_v39 = vadd.f32 %v1040_v37, %v1036_v38 }
 0x1e3   :  { %v1067_v40 = vmul.f32 -1.442695, %v1042_v39 }
 0x1e5   :  { %1191 = vpow2.f32 %v1067_v40 }
 0x1f2   :  { %v1192_v41 = vpop.eup %1191 }
 0x1f3   :  { %v1046_v42 = vadd.f32 1.0, %v1192_v41 }
 0x1f5   :  { %1193 = vrcp.f32 %v1046_v42 }
 0x202   :  { %v1194_v43 = vpop.eup %1193 }
 0x203   :  { %1050 = vst.msk [vmem:[#allocation7] sm:$0x1] %vm1049_vm5, %v1194_v43 }
 0x204   :  { %1246 = shalt.err (!%p1243_p0)
}
 0x205   :  { %1060 = dma.vmem_to_hbm [thread:$0]  %s1058_s1, 16, %s1328_s2, [#allocation4]  }
 0x206   :  { %1259 = dma.done.wait [#allocation4], 16  }
 0x207   :  { %1260 = vsyncadd [#allocation4], 4294967280 }
 0x208   :  { %1064 = vsyncpa [#allocation3], 1 }
 0x209   :  { %1065 = vsyncpa [#allocation6], 1 }
 0x20a   :  { %1066 = vsyncpa [#allocation4], 1 }

</bundles_post_ra>
